<compile_context>
chip_gen: v6e
topology: v6e:2x2x1
jax: 0.10.0
libtpu: 0.0.40
codegen_flags: <defaults>
</compile_context>

<pallas_src>
import math

import jax
import jax.numpy as jnp
from jax.experimental import pallas as pl
from jax.experimental.pallas import tpu as pltpu

VOCAB = ['1', '2', '3', '4', '5', '6', '7', '8', '9', 'a', 'b', 'c', 'd']


# ----------------------------- Pallas kernel ------------------------------ #
def rnn_acceptor_kernel(x_ref, wih_ref, whh_ref, bias_ref, hc0_ref, headw_ref,
                        out_ref):
    """Forward pass for one batch block, everything resident in VMEM.

    x_ref     : (T, B, E)      one-hot input sequence block (float32)
    wih_ref   : (E, 4H)        input->gate weights, i/f/o columns pre-scaled 0.5
    whh_ref   : (H, 4H)        hidden->gate weights, i/f/o columns pre-scaled 0.5
    bias_ref  : (3, W)         row0: folded+scaled LSTM bias (4H),
                               row1: b1 (D1, padded), row2: b2 (D2, padded)
    hc0_ref   : (2, B, H)      stacked initial hidden / cell state
    headw_ref : (H + D1, D1)   rows 0:H = w1^T, rows H:H+D1 = w2^T (lane-padded)
    out_ref   : (B, D2)
    """
    T, B, E = x_ref.shape
    H, G = whh_ref.shape                       # G == 4H
    D1 = headw_ref.shape[1]
    D2 = out_ref.shape[1]

    # ---- static parameter views (off the serial chain) ----
    b_lstm = bias_ref[0:1, 0:G]                # (1, 4H) pre-scaled folded bias
    b1 = bias_ref[1:2, 0:D1]                   # (1, D1)
    b2 = bias_ref[2:3, 0:D2]                   # (1, D2)
    whh = whh_ref[...]                         # (H, 4H)

    # ---- hoisted input projection: ONE matmul for all T steps & all gates ----
    x_flat = x_ref[...].reshape(T * B, E)
    gx = (jnp.dot(x_flat, wih_ref[...],
                  preferred_element_type=jnp.float32) + b_lstm).reshape(T, B, G)

    # ---- recurrence: 1 lane-dense MXU matmul + 1 fused tanh per step ----
    h = hc0_ref[0]                             # (B, H)
    c = hc0_ref[1]                             # (B, H)
    for t in range(T):                         # T small & static: fully unrolled
        gates = gx[t] + jnp.dot(h, whh, preferred_element_type=jnp.float32)
        tg = jnp.tanh(gates)                   # all 4 gates in one EUP pass
        # i/f/o columns were pre-scaled by 0.5 -> sigmoid(x) = 0.5*(tanh(x/2)+1)
        i_g = 0.5 * (tg[:, 0 * H:1 * H] + 1.0)
        f_g = 0.5 * (tg[:, 1 * H:2 * H] + 1.0)
        g_g = tg[:, 2 * H:3 * H]
        o_g = 0.5 * (tg[:, 3 * H:4 * H] + 1.0)
        c = f_g * c + i_g * g_g
        h = o_g * jnp.tanh(c)

    # ---- MLP head: linear1 -> tanh -> linear2 ----
    w1t = headw_ref[0:H, 0:D1]                 # (H, D1)
    w2t = headw_ref[H:H + D1, 0:D2]            # (D1, D2)
    z = jnp.tanh(jnp.dot(h, w1t, preferred_element_type=jnp.float32) + b1)
    out = jnp.dot(z, w2t, preferred_element_type=jnp.float32) + b2
    out_ref[...] = out.astype(out_ref.dtype)


# -------------------- one-time parameter preparation ----------------------- #
def prepare_params(params):
    """Transpose / concatenate / fold / pre-scale torch-layout params once.

    Produces the 4 packed weight arrays the kernel consumes. The 0.5 sigmoid
    pre-scale is applied consistently to the i/f/o columns of wih, whh AND the
    folded bias (g columns unscaled), so the kernel's single tanh over the
    (B, 4H) gate block reproduces sigmoid/tanh exactly.
    """
    w_ih, w_hh, b_ih, b_hh, w1, b1, w2, b2 = params
    H = w_hh.shape[1]
    G = 4 * H
    D1 = w1.shape[0]
    D2 = w2.shape[0]

    wih_t = jnp.transpose(w_ih).astype(jnp.float32)        # (E, 4H)
    whh_t = jnp.transpose(w_hh).astype(jnp.float32)        # (H, 4H)
    bias = (b_ih + b_hh).astype(jnp.float32)                # (4H,)

    # PyTorch gate order [i, f, g, o]: scale i/f/o by 0.5, leave g at 1.0.
    scale = jnp.concatenate([jnp.full((H,), 0.5, jnp.float32),
                             jnp.full((H,), 0.5, jnp.float32),
                             jnp.ones((H,), jnp.float32),
                             jnp.full((H,), 0.5, jnp.float32)])
    wih_cat = wih_t * scale[None, :]                         # (E, 4H)
    whh_cat = whh_t * scale[None, :]                         # (H, 4H)
    bias_cat = bias * scale                                  # (4H,)

    # bias_pack: [scaled LSTM bias ; b1 ; b2], each padded to a common width.
    pad_w = max(G, D1, D2)

    def pad_row(v):
        v = v.reshape(1, -1).astype(jnp.float32)
        return jnp.pad(v, ((0, 0), (0, pad_w - v.shape[-1])))

    bias_pack = jnp.concatenate(
        [pad_row(bias_cat), pad_row(b1), pad_row(b2)], axis=0)   # (3, pad_w)

    # headw: rows 0:H = w1^T (H, D1); rows H:H+D1 = w2^T padded to D1 lanes.
    w1t = jnp.transpose(w1).astype(jnp.float32)              # (H, D1)
    w2t = jnp.transpose(w2).astype(jnp.float32)              # (D1, D2)
    w2t_pad = jnp.pad(w2t, ((0, 0), (0, D1 - D2)))
    headw = jnp.concatenate([w1t, w2t_pad], axis=0)          # (H + D1, D1)

    return (wih_cat, whh_cat, bias_pack, headw)


# ------------------------------ wrapper ----------------------------------- #
def _rnn_acceptor_forward(x, prepped, hc0):
    """x: (T, B_total, E) float32, hc0: (2, B_total, H). Returns (B_total, 2)."""
    T, B_total, E = x.shape
    wih_cat, whh_cat, bias_pack, headw = prepped
    H, G = whh_cat.shape
    D1 = headw.shape[1]
    D2 = 2

    # Batch-block grid: independent blocks, sharded across TCs on megacore
    # parts ("parallel"); weights keep a constant block index -> stay resident.
    B_blk = 8 if B_total % 8 == 0 else B_total
    NB = B_total // B_blk

    flops = (2 * T * B_total * E * G            # hoisted input projection
             + 2 * T * B_total * H * G          # recurrence matmuls
             + 2 * B_total * H * D1 + 2 * B_total * D1 * D2)
    transc = T * B_total * (G + H) + B_total * D1
    bytes_acc = 4 * (x.size + wih_cat.size + whh_cat.size + bias_pack.size
                     + hc0.size + headw.size + B_total * D2)

    out = pl.pallas_call(
        rnn_acceptor_kernel,
        out_shape=jax.ShapeDtypeStruct((B_total, D2), jnp.float32),
        grid=(NB,),
        in_specs=[
            pl.BlockSpec((T, B_blk, E), lambda nb: (0, nb, 0)),
            pl.BlockSpec(wih_cat.shape, lambda nb: (0, 0)),
            pl.BlockSpec(whh_cat.shape, lambda nb: (0, 0)),
            pl.BlockSpec(bias_pack.shape, lambda nb: (0, 0)),
            pl.BlockSpec((2, B_blk, H), lambda nb: (0, nb, 0)),
            pl.BlockSpec(headw.shape, lambda nb: (0, 0)),
        ],
        out_specs=pl.BlockSpec((B_blk, D2), lambda nb: (nb, 0)),
        compiler_params=pltpu.CompilerParams(
            dimension_semantics=("parallel",)),
        cost_estimate=pl.CostEstimate(flops=flops, transcendentals=transc,
                                      bytes_accessed=bytes_acc),
    )(x, wih_cat, whh_cat, bias_pack, hc0, headw)
    return out


rnn_acceptor_forward = jax.jit(_rnn_acceptor_forward)


# ------------------------- pure-JAX reference ------------------------------ #
def rnn_acceptor_reference(x, params, h0, c0):
    w_ih, w_hh, b_ih, b_hh, w1, b1, w2, b2 = params
    H = h0.shape[1]
    h, c = h0, c0
    for t in range(x.shape[0]):
        gates = x[t] @ w_ih.T + b_ih + h @ w_hh.T + b_hh
        i_g = jax.nn.sigmoid(gates[:, 0 * H:1 * H])
        f_g = jax.nn.sigmoid(gates[:, 1 * H:2 * H])
        g_g = jnp.tanh(gates[:, 2 * H:3 * H])
        o_g = jax.nn.sigmoid(gates[:, 3 * H:4 * H])
        c = f_g * c + i_g * g_g
        h = o_g * jnp.tanh(c)
    z = jnp.tanh(h @ w1.T + b1)
    return z @ w2.T + b2


# ------------------------------- main -------------------------------------- #
if __name__ == "__main__":
    # Module hyper-params (small, consistent with the torch module).
    vocab_size = len(VOCAB)          # 13
    embedding_dim = vocab_size       # forward() feeds one-hot rows of width 13
    weights_dim = 32                 # LSTMCell hidden size (H)
    hidden_layer_dim = 32            # linear1 output (D1)
    output_size = 2
    T = 8                            # sequence length
    B = 16                           # total sequences (2 grid blocks of 8)

    key = jax.random.PRNGKey(0)
    keys = jax.random.split(key, 12)

    # Deterministic parameter init (shapes match nn.LSTMCell / nn.Linear).
    k_lstm = 1.0 / math.sqrt(weights_dim)
    w_ih = jax.random.uniform(keys[0], (4 * weights_dim, embedding_dim),
                              jnp.float32, -k_lstm, k_lstm)
    w_hh = jax.random.uniform(keys[1], (4 * weights_dim, weights_dim),
                              jnp.float32, -k_lstm, k_lstm)
    b_ih = jax.random.uniform(keys[2], (4 * weights_dim,),
                              jnp.float32, -k_lstm, k_lstm)
    b_hh = jax.random.uniform(keys[3], (4 * weights_dim,),
                              jnp.float32, -k_lstm, k_lstm)

    k1 = 1.0 / math.sqrt(weights_dim)
    w1 = jax.random.uniform(keys[4], (hidden_layer_dim, weights_dim),
                            jnp.float32, -k1, k1)
    b1 = jax.random.uniform(keys[5], (hidden_layer_dim,),
                            jnp.float32, -k1, k1)
    k2 = 1.0 / math.sqrt(hidden_layer_dim)
    w2 = jax.random.uniform(keys[6], (output_size, hidden_layer_dim),
                            jnp.float32, -k2, k2)
    b2 = jax.random.uniform(keys[7], (output_size,),
                            jnp.float32, -k2, k2)
    params = (w_ih, w_hh, b_ih, b_hh, w1, b1, w2, b2)

    # One-time parameter packing (gate concat + sigmoid pre-scale fold + head).
    prepped = prepare_params(params)

    # torch forward() xavier_normal_-initializes h0/c0 each call (random);
    # reproduce the distribution deterministically: std = sqrt(2/(fan_in+fan_out)).
    std_xn = math.sqrt(2.0 / (weights_dim + 1))
    h0 = std_xn * jax.random.normal(keys[8], (B, weights_dim), jnp.float32)
    c0 = std_xn * jax.random.normal(keys[9], (B, weights_dim), jnp.float32)
    hc0 = jnp.stack([h0, c0], axis=0)                     # (2, B, H)

    # Input: one-hot sequences over VOCAB, shape (T, B, vocab) float32
    # (== torch x.view(len(x), -1, len(VOCAB)).float()).
    idx = jax.random.randint(keys[10], (T, B), 0, vocab_size)
    x = jax.nn.one_hot(idx, vocab_size, dtype=jnp.float32)   # (T, B, 13)

    out = rnn_acceptor_forward(x, prepped, hc0)
    out = jax.block_until_ready(out)

    ref = rnn_acceptor_reference(x, params, h0, c0)
    assert out.shape == (B, output_size)
    assert jnp.allclose(out, ref, rtol=1e-3, atol=1e-3), (out, ref)

    print("KERNEL_OK")
</pallas_src>

<mosaic_0001>
module attributes {stable_mosaic.version = 11 : i64} {
  func.func @rnn_acceptor_kernel(%arg0: i32, %arg1: memref<8x8x13xf32, #tpu.memory_space<vmem>>, %arg2: memref<13x128xf32, #tpu.memory_space<vmem>>, %arg3: memref<32x128xf32, #tpu.memory_space<vmem>>, %arg4: memref<3x128xf32, #tpu.memory_space<vmem>>, %arg5: memref<2x8x32xf32, #tpu.memory_space<vmem>>, %arg6: memref<64x32xf32, #tpu.memory_space<vmem>>, %arg7: memref<8x2xf32, #tpu.memory_space<vmem>>) attributes {dimension_semantics = [#tpu.dimension_semantics<parallel>], iteration_bounds = array<i64: 2>, scalar_prefetch = 0 : i64, scratch_operands = 0 : i64, tpu.core_type = #tpu.core_type<tc>, window_params = [{transform_indices = @transform_0, window_bounds = array<i64: 8, 8, 13>}, {pipeline_mode = #tpu.pipeline_mode<synchronous>, transform_indices = @transform_1, window_bounds = array<i64: 13, 128>}, {pipeline_mode = #tpu.pipeline_mode<synchronous>, transform_indices = @transform_2, window_bounds = array<i64: 32, 128>}, {pipeline_mode = #tpu.pipeline_mode<synchronous>, transform_indices = @transform_3, window_bounds = array<i64: 3, 128>}, {transform_indices = @transform_4, window_bounds = array<i64: 2, 8, 32>}, {pipeline_mode = #tpu.pipeline_mode<synchronous>, transform_indices = @transform_5, window_bounds = array<i64: 64, 32>}, {transform_indices = @transform_6, window_bounds = array<i64: 8, 2>}]} {
    %c0 = arith.constant 0 : index
    %c0_0 = arith.constant 0 : index
    %0 = vector.load %arg4[%c0, %c0_0] : memref<3x128xf32, #tpu.memory_space<vmem>>, vector<1x128xf32>
    %c1 = arith.constant 1 : index
    %c0_1 = arith.constant 0 : index
    %1 = vector.load %arg4[%c1, %c0_1] : memref<3x128xf32, #tpu.memory_space<vmem>>, vector<1x32xf32>
    %c2 = arith.constant 2 : index
    %c0_2 = arith.constant 0 : index
    %2 = vector.load %arg4[%c2, %c0_2] : memref<3x128xf32, #tpu.memory_space<vmem>>, vector<1x2xf32>
    %c0_3 = arith.constant 0 : index
    %c0_4 = arith.constant 0 : index
    %3 = vector.load %arg3[%c0_3, %c0_4] : memref<32x128xf32, #tpu.memory_space<vmem>>, vector<32x128xf32>
    %c0_5 = arith.constant 0 : index
    %c0_6 = arith.constant 0 : index
    %c0_7 = arith.constant 0 : index
    %4 = vector.load %arg1[%c0_5, %c0_6, %c0_7] : memref<8x8x13xf32, #tpu.memory_space<vmem>>, vector<8x8x13xf32>
    %5 = vector.shape_cast %4 : vector<8x8x13xf32> to vector<64x13xf32>
    %c0_8 = arith.constant 0 : index
    %c0_9 = arith.constant 0 : index
    %6 = vector.load %arg2[%c0_8, %c0_9] : memref<13x128xf32, #tpu.memory_space<vmem>>, vector<13x128xf32>
    %cst = arith.constant dense<0.000000e+00> : vector<64x128xf32>
    %7 = tpu.matmul %5, %6, %cst {dimension_numbers = #tpu.dot_dimension_numbers<[1], [0], [0], [1], [0, 0, 1, 1], [], []>} : vector<64x13xf32>, vector<13x128xf32>, vector<64x128xf32> -> vector<64x128xf32>
    %8 = vector.broadcast %0 : vector<1x128xf32> to vector<64x128xf32>
    %9 = arith.addf %7, %8 : vector<64x128xf32>
    %10 = vector.shape_cast %9 : vector<64x128xf32> to vector<8x8x128xf32>
    %c0_10 = arith.constant 0 : index
    %c0_11 = arith.constant 0 : index
    %c0_12 = arith.constant 0 : index
    %11 = vector.load %arg5[%c0_10, %c0_11, %c0_12] : memref<2x8x32xf32, #tpu.memory_space<vmem>>, vector<1x8x32xf32>
    %12 = vector.shape_cast %11 : vector<1x8x32xf32> to vector<8x32xf32>
    %c1_13 = arith.constant 1 : index
    %c0_14 = arith.constant 0 : index
    %c0_15 = arith.constant 0 : index
    %13 = vector.load %arg5[%c1_13, %c0_14, %c0_15] : memref<2x8x32xf32, #tpu.memory_space<vmem>>, vector<1x8x32xf32>
    %14 = vector.shape_cast %13 : vector<1x8x32xf32> to vector<8x32xf32>
    %15 = vector.extract_strided_slice %10 {offsets = [0, 0, 0], sizes = [1, 8, 128], strides = [1, 1, 1]} : vector<8x8x128xf32> to vector<1x8x128xf32>
    %16 = vector.shape_cast %15 : vector<1x8x128xf32> to vector<8x128xf32>
    %cst_16 = arith.constant dense<0.000000e+00> : vector<8x128xf32>
    %17 = tpu.matmul %12, %3, %cst_16 {dimension_numbers = #tpu.dot_dimension_numbers<[1], [0], [0], [1], [0, 0, 1, 1], [], []>} : vector<8x32xf32>, vector<32x128xf32>, vector<8x128xf32> -> vector<8x128xf32>
    %18 = arith.addf %16, %17 : vector<8x128xf32>
    %19 = math.tanh %18 : vector<8x128xf32>
    %20 = vector.extract_strided_slice %19 {offsets = [0, 0], sizes = [8, 32], strides = [1, 1]} : vector<8x128xf32> to vector<8x32xf32>
    %cst_17 = arith.constant 1.000000e+00 : f32
    %21 = vector.broadcast %cst_17 : f32 to vector<8x32xf32>
    %22 = arith.addf %20, %21 : vector<8x32xf32>
    %cst_18 = arith.constant 5.000000e-01 : f32
    %23 = vector.broadcast %cst_18 : f32 to vector<8x32xf32>
    %24 = arith.mulf %23, %22 : vector<8x32xf32>
    %25 = vector.extract_strided_slice %19 {offsets = [0, 32], sizes = [8, 32], strides = [1, 1]} : vector<8x128xf32> to vector<8x32xf32>
    %cst_19 = arith.constant 1.000000e+00 : f32
    %26 = vector.broadcast %cst_19 : f32 to vector<8x32xf32>
    %27 = arith.addf %25, %26 : vector<8x32xf32>
    %cst_20 = arith.constant 5.000000e-01 : f32
    %28 = vector.broadcast %cst_20 : f32 to vector<8x32xf32>
    %29 = arith.mulf %28, %27 : vector<8x32xf32>
    %30 = vector.extract_strided_slice %19 {offsets = [0, 64], sizes = [8, 32], strides = [1, 1]} : vector<8x128xf32> to vector<8x32xf32>
    %31 = vector.extract_strided_slice %19 {offsets = [0, 96], sizes = [8, 32], strides = [1, 1]} : vector<8x128xf32> to vector<8x32xf32>
    %cst_21 = arith.constant 1.000000e+00 : f32
    %32 = vector.broadcast %cst_21 : f32 to vector<8x32xf32>
    %33 = arith.addf %31, %32 : vector<8x32xf32>
    %cst_22 = arith.constant 5.000000e-01 : f32
    %34 = vector.broadcast %cst_22 : f32 to vector<8x32xf32>
    %35 = arith.mulf %34, %33 : vector<8x32xf32>
    %36 = arith.mulf %29, %14 : vector<8x32xf32>
    %37 = arith.mulf %24, %30 : vector<8x32xf32>
    %38 = arith.addf %36, %37 : vector<8x32xf32>
    %39 = math.tanh %38 : vector<8x32xf32>
    %40 = arith.mulf %35, %39 : vector<8x32xf32>
    %41 = vector.extract_strided_slice %10 {offsets = [1, 0, 0], sizes = [1, 8, 128], strides = [1, 1, 1]} : vector<8x8x128xf32> to vector<1x8x128xf32>
    %42 = vector.shape_cast %41 : vector<1x8x128xf32> to vector<8x128xf32>
    %cst_23 = arith.constant dense<0.000000e+00> : vector<8x128xf32>
    %43 = tpu.matmul %40, %3, %cst_23 {dimension_numbers = #tpu.dot_dimension_numbers<[1], [0], [0], [1], [0, 0, 1, 1], [], []>} : vector<8x32xf32>, vector<32x128xf32>, vector<8x128xf32> -> vector<8x128xf32>
    %44 = arith.addf %42, %43 : vector<8x128xf32>
    %45 = math.tanh %44 : vector<8x128xf32>
    %46 = vector.extract_strided_slice %45 {offsets = [0, 0], sizes = [8, 32], strides = [1, 1]} : vector<8x128xf32> to vector<8x32xf32>
    %cst_24 = arith.constant 1.000000e+00 : f32
    %47 = vector.broadcast %cst_24 : f32 to vector<8x32xf32>
    %48 = arith.addf %46, %47 : vector<8x32xf32>
    %cst_25 = arith.constant 5.000000e-01 : f32
    %49 = vector.broadcast %cst_25 : f32 to vector<8x32xf32>
    %50 = arith.mulf %49, %48 : vector<8x32xf32>
    %51 = vector.extract_strided_slice %45 {offsets = [0, 32], sizes = [8, 32], strides = [1, 1]} : vector<8x128xf32> to vector<8x32xf32>
    %cst_26 = arith.constant 1.000000e+00 : f32
    %52 = vector.broadcast %cst_26 : f32 to vector<8x32xf32>
    %53 = arith.addf %51, %52 : vector<8x32xf32>
    %cst_27 = arith.constant 5.000000e-01 : f32
    %54 = vector.broadcast %cst_27 : f32 to vector<8x32xf32>
    %55 = arith.mulf %54, %53 : vector<8x32xf32>
    %56 = vector.extract_strided_slice %45 {offsets = [0, 64], sizes = [8, 32], strides = [1, 1]} : vector<8x128xf32> to vector<8x32xf32>
    %57 = vector.extract_strided_slice %45 {offsets = [0, 96], sizes = [8, 32], strides = [1, 1]} : vector<8x128xf32> to vector<8x32xf32>
    %cst_28 = arith.constant 1.000000e+00 : f32
    %58 = vector.broadcast %cst_28 : f32 to vector<8x32xf32>
    %59 = arith.addf %57, %58 : vector<8x32xf32>
    %cst_29 = arith.constant 5.000000e-01 : f32
    %60 = vector.broadcast %cst_29 : f32 to vector<8x32xf32>
    %61 = arith.mulf %60, %59 : vector<8x32xf32>
    %62 = arith.mulf %55, %38 : vector<8x32xf32>
    %63 = arith.mulf %50, %56 : vector<8x32xf32>
    %64 = arith.addf %62, %63 : vector<8x32xf32>
    %65 = math.tanh %64 : vector<8x32xf32>
    %66 = arith.mulf %61, %65 : vector<8x32xf32>
    %67 = vector.extract_strided_slice %10 {offsets = [2, 0, 0], sizes = [1, 8, 128], strides = [1, 1, 1]} : vector<8x8x128xf32> to vector<1x8x128xf32>
    %68 = vector.shape_cast %67 : vector<1x8x128xf32> to vector<8x128xf32>
    %cst_30 = arith.constant dense<0.000000e+00> : vector<8x128xf32>
    %69 = tpu.matmul %66, %3, %cst_30 {dimension_numbers = #tpu.dot_dimension_numbers<[1], [0], [0], [1], [0, 0, 1, 1], [], []>} : vector<8x32xf32>, vector<32x128xf32>, vector<8x128xf32> -> vector<8x128xf32>
    %70 = arith.addf %68, %69 : vector<8x128xf32>
    %71 = math.tanh %70 : vector<8x128xf32>
    %72 = vector.extract_strided_slice %71 {offsets = [0, 0], sizes = [8, 32], strides = [1, 1]} : vector<8x128xf32> to vector<8x32xf32>
    %cst_31 = arith.constant 1.000000e+00 : f32
    %73 = vector.broadcast %cst_31 : f32 to vector<8x32xf32>
    %74 = arith.addf %72, %73 : vector<8x32xf32>
    %cst_32 = arith.constant 5.000000e-01 : f32
    %75 = vector.broadcast %cst_32 : f32 to vector<8x32xf32>
    %76 = arith.mulf %75, %74 : vector<8x32xf32>
    %77 = vector.extract_strided_slice %71 {offsets = [0, 32], sizes = [8, 32], strides = [1, 1]} : vector<8x128xf32> to vector<8x32xf32>
    %cst_33 = arith.constant 1.000000e+00 : f32
    %78 = vector.broadcast %cst_33 : f32 to vector<8x32xf32>
    %79 = arith.addf %77, %78 : vector<8x32xf32>
    %cst_34 = arith.constant 5.000000e-01 : f32
    %80 = vector.broadcast %cst_34 : f32 to vector<8x32xf32>
    %81 = arith.mulf %80, %79 : vector<8x32xf32>
    %82 = vector.extract_strided_slice %71 {offsets = [0, 64], sizes = [8, 32], strides = [1, 1]} : vector<8x128xf32> to vector<8x32xf32>
    %83 = vector.extract_strided_slice %71 {offsets = [0, 96], sizes = [8, 32], strides = [1, 1]} : vector<8x128xf32> to vector<8x32xf32>
    %cst_35 = arith.constant 1.000000e+00 : f32
    %84 = vector.broadcast %cst_35 : f32 to vector<8x32xf32>
    %85 = arith.addf %83, %84 : vector<8x32xf32>
    %cst_36 = arith.constant 5.000000e-01 : f32
    %86 = vector.broadcast %cst_36 : f32 to vector<8x32xf32>
    %87 = arith.mulf %86, %85 : vector<8x32xf32>
    %88 = arith.mulf %81, %64 : vector<8x32xf32>
    %89 = arith.mulf %76, %82 : vector<8x32xf32>
    %90 = arith.addf %88, %89 : vector<8x32xf32>
    %91 = math.tanh %90 : vector<8x32xf32>
    %92 = arith.mulf %87, %91 : vector<8x32xf32>
    %93 = vector.extract_strided_slice %10 {offsets = [3, 0, 0], sizes = [1, 8, 128], strides = [1, 1, 1]} : vector<8x8x128xf32> to vector<1x8x128xf32>
    %94 = vector.shape_cast %93 : vector<1x8x128xf32> to vector<8x128xf32>
    %cst_37 = arith.constant dense<0.000000e+00> : vector<8x128xf32>
    %95 = tpu.matmul %92, %3, %cst_37 {dimension_numbers = #tpu.dot_dimension_numbers<[1], [0], [0], [1], [0, 0, 1, 1], [], []>} : vector<8x32xf32>, vector<32x128xf32>, vector<8x128xf32> -> vector<8x128xf32>
    %96 = arith.addf %94, %95 : vector<8x128xf32>
    %97 = math.tanh %96 : vector<8x128xf32>
    %98 = vector.extract_strided_slice %97 {offsets = [0, 0], sizes = [8, 32], strides = [1, 1]} : vector<8x128xf32> to vector<8x32xf32>
    %cst_38 = arith.constant 1.000000e+00 : f32
    %99 = vector.broadcast %cst_38 : f32 to vector<8x32xf32>
    %100 = arith.addf %98, %99 : vector<8x32xf32>
    %cst_39 = arith.constant 5.000000e-01 : f32
    %101 = vector.broadcast %cst_39 : f32 to vector<8x32xf32>
    %102 = arith.mulf %101, %100 : vector<8x32xf32>
    %103 = vector.extract_strided_slice %97 {offsets = [0, 32], sizes = [8, 32], strides = [1, 1]} : vector<8x128xf32> to vector<8x32xf32>
    %cst_40 = arith.constant 1.000000e+00 : f32
    %104 = vector.broadcast %cst_40 : f32 to vector<8x32xf32>
    %105 = arith.addf %103, %104 : vector<8x32xf32>
    %cst_41 = arith.constant 5.000000e-01 : f32
    %106 = vector.broadcast %cst_41 : f32 to vector<8x32xf32>
    %107 = arith.mulf %106, %105 : vector<8x32xf32>
    %108 = vector.extract_strided_slice %97 {offsets = [0, 64], sizes = [8, 32], strides = [1, 1]} : vector<8x128xf32> to vector<8x32xf32>
    %109 = vector.extract_strided_slice %97 {offsets = [0, 96], sizes = [8, 32], strides = [1, 1]} : vector<8x128xf32> to vector<8x32xf32>
    %cst_42 = arith.constant 1.000000e+00 : f32
    %110 = vector.broadcast %cst_42 : f32 to vector<8x32xf32>
    %111 = arith.addf %109, %110 : vector<8x32xf32>
    %cst_43 = arith.constant 5.000000e-01 : f32
    %112 = vector.broadcast %cst_43 : f32 to vector<8x32xf32>
    %113 = arith.mulf %112, %111 : vector<8x32xf32>
    %114 = arith.mulf %107, %90 : vector<8x32xf32>
    %115 = arith.mulf %102, %108 : vector<8x32xf32>
    %116 = arith.addf %114, %115 : vector<8x32xf32>
    %117 = math.tanh %116 : vector<8x32xf32>
    %118 = arith.mulf %113, %117 : vector<8x32xf32>
    %119 = vector.extract_strided_slice %10 {offsets = [4, 0, 0], sizes = [1, 8, 128], strides = [1, 1, 1]} : vector<8x8x128xf32> to vector<1x8x128xf32>
    %120 = vector.shape_cast %119 : vector<1x8x128xf32> to vector<8x128xf32>
    %cst_44 = arith.constant dense<0.000000e+00> : vector<8x128xf32>
    %121 = tpu.matmul %118, %3, %cst_44 {dimension_numbers = #tpu.dot_dimension_numbers<[1], [0], [0], [1], [0, 0, 1, 1], [], []>} : vector<8x32xf32>, vector<32x128xf32>, vector<8x128xf32> -> vector<8x128xf32>
    %122 = arith.addf %120, %121 : vector<8x128xf32>
    %123 = math.tanh %122 : vector<8x128xf32>
    %124 = vector.extract_strided_slice %123 {offsets = [0, 0], sizes = [8, 32], strides = [1, 1]} : vector<8x128xf32> to vector<8x32xf32>
    %cst_45 = arith.constant 1.000000e+00 : f32
    %125 = vector.broadcast %cst_45 : f32 to vector<8x32xf32>
    %126 = arith.addf %124, %125 : vector<8x32xf32>
    %cst_46 = arith.constant 5.000000e-01 : f32
    %127 = vector.broadcast %cst_46 : f32 to vector<8x32xf32>
    %128 = arith.mulf %127, %126 : vector<8x32xf32>
    %129 = vector.extract_strided_slice %123 {offsets = [0, 32], sizes = [8, 32], strides = [1, 1]} : vector<8x128xf32> to vector<8x32xf32>
    %cst_47 = arith.constant 1.000000e+00 : f32
    %130 = vector.broadcast %cst_47 : f32 to vector<8x32xf32>
    %131 = arith.addf %129, %130 : vector<8x32xf32>
    %cst_48 = arith.constant 5.000000e-01 : f32
    %132 = vector.broadcast %cst_48 : f32 to vector<8x32xf32>
    %133 = arith.mulf %132, %131 : vector<8x32xf32>
    %134 = vector.extract_strided_slice %123 {offsets = [0, 64], sizes = [8, 32], strides = [1, 1]} : vector<8x128xf32> to vector<8x32xf32>
    %135 = vector.extract_strided_slice %123 {offsets = [0, 96], sizes = [8, 32], strides = [1, 1]} : vector<8x128xf32> to vector<8x32xf32>
    %cst_49 = arith.constant 1.000000e+00 : f32
    %136 = vector.broadcast %cst_49 : f32 to vector<8x32xf32>
    %137 = arith.addf %135, %136 : vector<8x32xf32>
    %cst_50 = arith.constant 5.000000e-01 : f32
    %138 = vector.broadcast %cst_50 : f32 to vector<8x32xf32>
    %139 = arith.mulf %138, %137 : vector<8x32xf32>
    %140 = arith.mulf %133, %116 : vector<8x32xf32>
    %141 = arith.mulf %128, %134 : vector<8x32xf32>
    %142 = arith.addf %140, %141 : vector<8x32xf32>
    %143 = math.tanh %142 : vector<8x32xf32>
    %144 = arith.mulf %139, %143 : vector<8x32xf32>
    %145 = vector.extract_strided_slice %10 {offsets = [5, 0, 0], sizes = [1, 8, 128], strides = [1, 1, 1]} : vector<8x8x128xf32> to vector<1x8x128xf32>
    %146 = vector.shape_cast %145 : vector<1x8x128xf32> to vector<8x128xf32>
    %cst_51 = arith.constant dense<0.000000e+00> : vector<8x128xf32>
    %147 = tpu.matmul %144, %3, %cst_51 {dimension_numbers = #tpu.dot_dimension_numbers<[1], [0], [0], [1], [0, 0, 1, 1], [], []>} : vector<8x32xf32>, vector<32x128xf32>, vector<8x128xf32> -> vector<8x128xf32>
    %148 = arith.addf %146, %147 : vector<8x128xf32>
    %149 = math.tanh %148 : vector<8x128xf32>
    %150 = vector.extract_strided_slice %149 {offsets = [0, 0], sizes = [8, 32], strides = [1, 1]} : vector<8x128xf32> to vector<8x32xf32>
    %cst_52 = arith.constant 1.000000e+00 : f32
    %151 = vector.broadcast %cst_52 : f32 to vector<8x32xf32>
    %152 = arith.addf %150, %151 : vector<8x32xf32>
    %cst_53 = arith.constant 5.000000e-01 : f32
    %153 = vector.broadcast %cst_53 : f32 to vector<8x32xf32>
    %154 = arith.mulf %153, %152 : vector<8x32xf32>
    %155 = vector.extract_strided_slice %149 {offsets = [0, 32], sizes = [8, 32], strides = [1, 1]} : vector<8x128xf32> to vector<8x32xf32>
    %cst_54 = arith.constant 1.000000e+00 : f32
    %156 = vector.broadcast %cst_54 : f32 to vector<8x32xf32>
    %157 = arith.addf %155, %156 : vector<8x32xf32>
    %cst_55 = arith.constant 5.000000e-01 : f32
    %158 = vector.broadcast %cst_55 : f32 to vector<8x32xf32>
    %159 = arith.mulf %158, %157 : vector<8x32xf32>
    %160 = vector.extract_strided_slice %149 {offsets = [0, 64], sizes = [8, 32], strides = [1, 1]} : vector<8x128xf32> to vector<8x32xf32>
    %161 = vector.extract_strided_slice %149 {offsets = [0, 96], sizes = [8, 32], strides = [1, 1]} : vector<8x128xf32> to vector<8x32xf32>
    %cst_56 = arith.constant 1.000000e+00 : f32
    %162 = vector.broadcast %cst_56 : f32 to vector<8x32xf32>
    %163 = arith.addf %161, %162 : vector<8x32xf32>
    %cst_57 = arith.constant 5.000000e-01 : f32
    %164 = vector.broadcast %cst_57 : f32 to vector<8x32xf32>
    %165 = arith.mulf %164, %163 : vector<8x32xf32>
    %166 = arith.mulf %159, %142 : vector<8x32xf32>
    %167 = arith.mulf %154, %160 : vector<8x32xf32>
    %168 = arith.addf %166, %167 : vector<8x32xf32>
    %169 = math.tanh %168 : vector<8x32xf32>
    %170 = arith.mulf %165, %169 : vector<8x32xf32>
    %171 = vector.extract_strided_slice %10 {offsets = [6, 0, 0], sizes = [1, 8, 128], strides = [1, 1, 1]} : vector<8x8x128xf32> to vector<1x8x128xf32>
    %172 = vector.shape_cast %171 : vector<1x8x128xf32> to vector<8x128xf32>
    %cst_58 = arith.constant dense<0.000000e+00> : vector<8x128xf32>
    %173 = tpu.matmul %170, %3, %cst_58 {dimension_numbers = #tpu.dot_dimension_numbers<[1], [0], [0], [1], [0, 0, 1, 1], [], []>} : vector<8x32xf32>, vector<32x128xf32>, vector<8x128xf32> -> vector<8x128xf32>
    %174 = arith.addf %172, %173 : vector<8x128xf32>
    %175 = math.tanh %174 : vector<8x128xf32>
    %176 = vector.extract_strided_slice %175 {offsets = [0, 0], sizes = [8, 32], strides = [1, 1]} : vector<8x128xf32> to vector<8x32xf32>
    %cst_59 = arith.constant 1.000000e+00 : f32
    %177 = vector.broadcast %cst_59 : f32 to vector<8x32xf32>
    %178 = arith.addf %176, %177 : vector<8x32xf32>
    %cst_60 = arith.constant 5.000000e-01 : f32
    %179 = vector.broadcast %cst_60 : f32 to vector<8x32xf32>
    %180 = arith.mulf %179, %178 : vector<8x32xf32>
    %181 = vector.extract_strided_slice %175 {offsets = [0, 32], sizes = [8, 32], strides = [1, 1]} : vector<8x128xf32> to vector<8x32xf32>
    %cst_61 = arith.constant 1.000000e+00 : f32
    %182 = vector.broadcast %cst_61 : f32 to vector<8x32xf32>
    %183 = arith.addf %181, %182 : vector<8x32xf32>
    %cst_62 = arith.constant 5.000000e-01 : f32
    %184 = vector.broadcast %cst_62 : f32 to vector<8x32xf32>
    %185 = arith.mulf %184, %183 : vector<8x32xf32>
    %186 = vector.extract_strided_slice %175 {offsets = [0, 64], sizes = [8, 32], strides = [1, 1]} : vector<8x128xf32> to vector<8x32xf32>
    %187 = vector.extract_strided_slice %175 {offsets = [0, 96], sizes = [8, 32], strides = [1, 1]} : vector<8x128xf32> to vector<8x32xf32>
    %cst_63 = arith.constant 1.000000e+00 : f32
    %188 = vector.broadcast %cst_63 : f32 to vector<8x32xf32>
    %189 = arith.addf %187, %188 : vector<8x32xf32>
    %cst_64 = arith.constant 5.000000e-01 : f32
    %190 = vector.broadcast %cst_64 : f32 to vector<8x32xf32>
    %191 = arith.mulf %190, %189 : vector<8x32xf32>
    %192 = arith.mulf %185, %168 : vector<8x32xf32>
    %193 = arith.mulf %180, %186 : vector<8x32xf32>
    %194 = arith.addf %192, %193 : vector<8x32xf32>
    %195 = math.tanh %194 : vector<8x32xf32>
    %196 = arith.mulf %191, %195 : vector<8x32xf32>
    %197 = vector.extract_strided_slice %10 {offsets = [7, 0, 0], sizes = [1, 8, 128], strides = [1, 1, 1]} : vector<8x8x128xf32> to vector<1x8x128xf32>
    %198 = vector.shape_cast %197 : vector<1x8x128xf32> to vector<8x128xf32>
    %cst_65 = arith.constant dense<0.000000e+00> : vector<8x128xf32>
    %199 = tpu.matmul %196, %3, %cst_65 {dimension_numbers = #tpu.dot_dimension_numbers<[1], [0], [0], [1], [0, 0, 1, 1], [], []>} : vector<8x32xf32>, vector<32x128xf32>, vector<8x128xf32> -> vector<8x128xf32>
    %200 = arith.addf %198, %199 : vector<8x128xf32>
    %201 = math.tanh %200 : vector<8x128xf32>
    %202 = vector.extract_strided_slice %201 {offsets = [0, 0], sizes = [8, 32], strides = [1, 1]} : vector<8x128xf32> to vector<8x32xf32>
    %cst_66 = arith.constant 1.000000e+00 : f32
    %203 = vector.broadcast %cst_66 : f32 to vector<8x32xf32>
    %204 = arith.addf %202, %203 : vector<8x32xf32>
    %cst_67 = arith.constant 5.000000e-01 : f32
    %205 = vector.broadcast %cst_67 : f32 to vector<8x32xf32>
    %206 = arith.mulf %205, %204 : vector<8x32xf32>
    %207 = vector.extract_strided_slice %201 {offsets = [0, 32], sizes = [8, 32], strides = [1, 1]} : vector<8x128xf32> to vector<8x32xf32>
    %cst_68 = arith.constant 1.000000e+00 : f32
    %208 = vector.broadcast %cst_68 : f32 to vector<8x32xf32>
    %209 = arith.addf %207, %208 : vector<8x32xf32>
    %cst_69 = arith.constant 5.000000e-01 : f32
    %210 = vector.broadcast %cst_69 : f32 to vector<8x32xf32>
    %211 = arith.mulf %210, %209 : vector<8x32xf32>
    %212 = vector.extract_strided_slice %201 {offsets = [0, 64], sizes = [8, 32], strides = [1, 1]} : vector<8x128xf32> to vector<8x32xf32>
    %213 = vector.extract_strided_slice %201 {offsets = [0, 96], sizes = [8, 32], strides = [1, 1]} : vector<8x128xf32> to vector<8x32xf32>
    %cst_70 = arith.constant 1.000000e+00 : f32
    %214 = vector.broadcast %cst_70 : f32 to vector<8x32xf32>
    %215 = arith.addf %213, %214 : vector<8x32xf32>
    %cst_71 = arith.constant 5.000000e-01 : f32
    %216 = vector.broadcast %cst_71 : f32 to vector<8x32xf32>
    %217 = arith.mulf %216, %215 : vector<8x32xf32>
    %218 = arith.mulf %211, %194 : vector<8x32xf32>
    %219 = arith.mulf %206, %212 : vector<8x32xf32>
    %220 = arith.addf %218, %219 : vector<8x32xf32>
    %221 = math.tanh %220 : vector<8x32xf32>
    %222 = arith.mulf %217, %221 : vector<8x32xf32>
    %c0_72 = arith.constant 0 : index
    %c0_73 = arith.constant 0 : index
    %223 = vector.load %arg6[%c0_72, %c0_73] : memref<64x32xf32, #tpu.memory_space<vmem>>, vector<32x32xf32>
    %c32 = arith.constant 32 : index
    %c0_74 = arith.constant 0 : index
    %224 = vector.load %arg6[%c32, %c0_74] : memref<64x32xf32, #tpu.memory_space<vmem>>, vector<32x2xf32>
    %cst_75 = arith.constant dense<0.000000e+00> : vector<8x32xf32>
    %225 = tpu.matmul %222, %223, %cst_75 {dimension_numbers = #tpu.dot_dimension_numbers<[1], [0], [0], [1], [0, 0, 1, 1], [], []>} : vector<8x32xf32>, vector<32x32xf32>, vector<8x32xf32> -> vector<8x32xf32>
    %226 = vector.broadcast %1 : vector<1x32xf32> to vector<8x32xf32>
    %227 = arith.addf %225, %226 : vector<8x32xf32>
    %228 = math.tanh %227 : vector<8x32xf32>
    %cst_76 = arith.constant dense<0.000000e+00> : vector<8x2xf32>
    %229 = tpu.matmul %228, %224, %cst_76 {dimension_numbers = #tpu.dot_dimension_numbers<[1], [0], [0], [1], [0, 0, 1, 1], [], []>} : vector<8x32xf32>, vector<32x2xf32>, vector<8x2xf32> -> vector<8x2xf32>
    %230 = vector.broadcast %2 : vector<1x2xf32> to vector<8x2xf32>
    %231 = arith.addf %229, %230 : vector<8x2xf32>
    %c0_77 = arith.constant 0 : index
    %c0_78 = arith.constant 0 : index
    %232 = vector.load %arg7[%c0_77, %c0_78] : memref<8x2xf32, #tpu.memory_space<vmem>>, vector<8x2xf32>
    tpu.vector_store %arg7[%c0_77, %c0_78], %231 {strides = array<i32>} : memref<8x2xf32, #tpu.memory_space<vmem>>, vector<8x2xf32>,
    return
  }
  func.func @transform_0(%arg0: i32) -> (i32, i32, i32) {
    %c0_i32 = arith.constant 0 : i32
    %c0_i32_0 = arith.constant 0 : i32
    %c0_i32_1 = arith.constant 0 : i32
    return %c0_i32, %arg0, %c0_i32_0 : i32, i32, i32
  }
  func.func @transform_1(%arg0: i32) -> (i32, i32) {
    %c0_i32 = arith.constant 0 : i32
    %c0_i32_0 = arith.constant 0 : i32
    %c0_i32_1 = arith.constant 0 : i32
    return %c0_i32, %c0_i32_0 : i32, i32
  }
  func.func @transform_2(%arg0: i32) -> (i32, i32) {
    %c0_i32 = arith.constant 0 : i32
    %c0_i32_0 = arith.constant 0 : i32
    %c0_i32_1 = arith.constant 0 : i32
    return %c0_i32, %c0_i32_0 : i32, i32
  }
  func.func @transform_3(%arg0: i32) -> (i32, i32) {
    %c0_i32 = arith.constant 0 : i32
    %c0_i32_0 = arith.constant 0 : i32
    %c0_i32_1 = arith.constant 0 : i32
    return %c0_i32, %c0_i32_0 : i32, i32
  }
  func.func @transform_4(%arg0: i32) -> (i32, i32, i32) {
    %c0_i32 = arith.constant 0 : i32
    %c0_i32_0 = arith.constant 0 : i32
    %c0_i32_1 = arith.constant 0 : i32
    return %c0_i32, %arg0, %c0_i32_0 : i32, i32, i32
  }
  func.func @transform_5(%arg0: i32) -> (i32, i32) {
    %c0_i32 = arith.constant 0 : i32
    %c0_i32_0 = arith.constant 0 : i32
    %c0_i32_1 = arith.constant 0 : i32
    return %c0_i32, %c0_i32_0 : i32, i32
  }
  func.func @transform_6(%arg0: i32) -> (i32, i32) {
    %c0_i32 = arith.constant 0 : i32
    %c0_i32_0 = arith.constant 0 : i32
    return %arg0, %c0_i32 : i32, i32
  }
}

</mosaic_0001>

<bundles_post_ra>
// kernel: _rnn_acceptor_forward.1
= control target key start
LH: loop header
LB: loop body
LE: loop exit
PB: predicated region body
PF: predicated region fallthrough
CT: control target
= control target key end

     0   :  { %s1893_s21 = smov 0   ;;  %s1895_s22 = smov 0   ;;  %s2201_s0 = inlined_call_operand.vmem [shape: f32[8,16,13], index: 0, kind: input, shape index: {}]   ;;  %s2202_s1 = inlined_call_operand.vmem [shape: f32[13,128], index: 1, kind: input, shape index: {}]   ;;  %s2203_s2 = inlined_call_operand.vmem [shape: f32[32,128], index: 2, kind: input, shape index: {}]   ;;  %s2204_s3 = inlined_call_operand.vmem [shape: f32[3,128], index: 3, kind: input, shape index: {}]   ;;  %s2205_s4 = inlined_call_operand.vmem [shape: f32[2,16,32], index: 4, kind: input, shape index: {}]   ;;  %s2206_s5 = inlined_call_operand.vmem [shape: f32[64,32], index: 5, kind: input, shape index: {}]   ;;  %s2207_s6 = inlined_call_operand.vmem [shape: f32[16,2], index: 6, kind: output, shape index: {}]  }
   0x1   :  { %s1897_s23 = smov 0  }
   0x2 LB: > { %s1545_s24 = sadd.s32 4294967295, %s1852_s23   ;;  %s1910_s25 = sadd.s32 1, %s1852_s23   ;;  %s1852_s23 = sphi %s1897_s23, %s2211_s23   ;;  %s1848_s22 = sphi %s1895_s22, %s2210_s22   ;;  %s1844_s21 = sphi %s1893_s21, %s2209_s21  }
   0x3   : > { %s20_s26 = ssub.s32 %s1852_s23, %s1910_s25  ;;  %s23_s27 = sadd.s32 1, %s1848_s22 }
   0x4   : > { %p21_p0 = scmp.eq.s32.totalorder %s20_s26, 0  ;;  %p30_p1 = scmp.ne.s32.totalorder %s1848_s22, %s1844_s21 }
   0x5   : > { %p31_p2 = scmp.eq.s32.totalorder %s1852_s23, 0  ;;  %p1548_p4 = scmp.ge.s32.totalorder %s1852_s23, 2 }
   0x6   : > { %s1919_s28 = scalar_select %p21_p0, %s1848_s22, %s23_s27  }
   0x7   : > { %p1921_p3 = por %p31_p2, %p30_p1  ;;  %204 = sbr.rel (%p1548_p4) target bundleno = 25 (0x19), region = 32 }
   0xc   : > { %207 = sbr.rel (!%p1921_p3) target bundleno = 20 (0x14), region = 36  ;;  %s209_s30 = sand.u32 (%p1921_p3), 1, %s1848_s22  }
   0xd   : > { %s1550_s7 = sshll.u32 (%p1921_p3), %s1852_s23, 3  ;;  %s1549_s8 = sshll.u32 (%p1921_p3), %s209_s30, 6 }
   0xe   : > { %s213_s11 = scalar_lea.vmem (%p1921_p3), %s2201_s0, %s1550_s7  ;;  %s211_s12 = scalar_lea.vmem (%p1921_p3), [#allocation2], %s1549_s8 }
   0xf   : > { %v256_v0 = vld [vmem:[%s213_s11] sm:$0xff] (%p1921_p3)  ;;  %v258_v1 = vld [vmem:[%s213_s11 + $0x10] sm:$0xff] (%p1921_p3) }
  0x10   : > { %v260_v2 = vld [vmem:[%s213_s11 + $0x20] sm:$0xff] (%p1921_p3)  ;;  %257 = vst [vmem:[%s211_s12] sm:$0xff] (%p1921_p3), %v256_v0  ;;  %259 = vst [vmem:[%s211_s12 + $0x8] sm:$0xff] (%p1921_p3), %v258_v1  ;;  %v262_v3 = vld [vmem:[%s213_s11 + $0x30] sm:$0xff] (%p1921_p3) }
  0x11   : > { %261 = vst [vmem:[%s211_s12 + $0x10] sm:$0xff] %v260_v2  ;;  %v264_v4 = vld [vmem:[%s213_s11 + $0x40] sm:$0xff]  ;;  %v266_v5 = vld [vmem:[%s213_s11 + $0x50] sm:$0xff]  ;;  %263 = vst [vmem:[%s211_s12 + $0x18] sm:$0xff] %v262_v3 }
  0x12   : > { %265 = vst [vmem:[%s211_s12 + $0x20] sm:$0xff] %v264_v4  ;;  %267 = vst [vmem:[%s211_s12 + $0x28] sm:$0xff] %v266_v5  ;;  %v268_v6 = vld [vmem:[%s213_s11 + $0x60] sm:$0xff]  ;;  %v270_v7 = vld [vmem:[%s213_s11 + $0x70] sm:$0xff] }
  0x13   : > { %269 = vst [vmem:[%s211_s12 + $0x30] sm:$0xff] %v268_v6  ;;  %271 = vst [vmem:[%s211_s12 + $0x38] sm:$0xff] %v270_v7 }
  0x14 PF: > { %277 = sbr.rel (!%p1921_p3) target bundleno = 25 (0x19), region = 74  ;;  %s279_s13 = sand.u32 (%p1921_p3), 1, %s1848_s22  }
  0x15   : > { %s1552_s14 = sshll.u32 (%p1921_p3), %s1852_s23, 3  ;;  %s1551_s15 = sshll.u32 (%p1921_p3), %s279_s13, 4 }
  0x16   : > { %s283_s18 = scalar_lea.vmem (%p1921_p3), %s2205_s4, %s1552_s14  ;;  %s281_s19 = scalar_lea.vmem (%p1921_p3), [#allocation3], %s1551_s15 }
  0x17   : > { %v314_v8 = vld [vmem:[%s283_s18] sm:$0xff] (%p1921_p3)  ;;  %v316_v9 = vld [vmem:[%s283_s18 + $0x10] sm:$0xff] (%p1921_p3) }
  0x18   : > { %315 = vst [vmem:[%s281_s19] sm:$0xff] (%p1921_p3), %v314_v8  ;;  %317 = vst [vmem:[%s281_s19 + $0x8] sm:$0xff] (%p1921_p3), %v316_v9 }
  0x19 PF: > { %p1553_p5 = scmp.ge.s32.totalorder %s1852_s23, 1  ;;  %p322_p6 = scmp.lt.s32.totalorder %s1852_s23, 3 }
  0x1b   : > { %p323_p7 = pnand %p1553_p5, %p322_p6 }
  0x1c   : > { %s329_s8 = sand.u32 (!%p323_p7), 1, %s1844_s21   ;;  %s1856_s20 = smov (!%p323_p7), 64  }
  0x1d   : > { %326 = sbr.rel (%p323_p7) target bundleno = 5961 (0x1749), region = 112  ;;  %s1554_s11 = sshll.u32 (!%p323_p7), %s329_s8, 6 }
  0x1e   : > { %s1961_s12 = sshll.u32 (!%p323_p7), %s329_s8, 4  ;;  %s1969_s21 = scalar_lea.vmem (!%p323_p7), [#allocation2], %s1554_s11 }
  0x1f   : > { %s338_s17 = scalar_lea.vmem (!%p323_p7), [#allocation3], %s1961_s12  ;;  %s1857_s26 = smov (!%p323_p7), 32  }
  0x20   : > { %p368_p8 = scmp.lt.s32.totalorder (!%p323_p7), %s1545_s24, 1 }
  0x22   : > { %v388_v10 = vld [vmem:[%s2202_s1 + $0x8] sm:$0x1f]  ;;  %vm418_vm0 = vcmask 1044480   ;;  %v1948_v11 = vld [vmem:[%s2203_s2 + $0x18] sm:$0xff]  ;;  %v387_v12 = vld [vmem:[%s2202_s1] sm:$0xff]  ;;  %v1854_v13 = vmov 0.0  }
  0x23   : > { %1642 = vmatprep.subr.msk.mxu0 %vm418_vm0, %v388_v10  ;;  %1658 = vmatprep.subr.mxu1 %v1854_v13  ;;  %v1958_v14 = vld [vmem:[%s2203_s2 + $0x10] sm:$0xff]  ;;  %vm393_vm1 = vcmask 105472   ;;  %v1967_v15 = vld [vmem:[%s2203_s2 + $0x8] sm:$0xff]  ;;  %v379_v16 = vld [vmem:[%s1969_s21] sm:$0xff]  ;;  %vm530_vm2 = vcmask 261120   ;;  %vm1855_vm3 = vmmov 0  }
  0x24   : > { %1643 = vmatpush3.msk.msra.mxu0 %vm418_vm0, %v388_v10  ;;  %1659 = vmatpush3.msra.mxu1 %v1948_v11  ;;  %v380_v17 = vld [vmem:[%s1969_s21 + $0x8] sm:$0xff]  ;;  %v1979_v18 = vld [vmem:[%s2203_s2] sm:$0xff]  ;;  %v381_v53 = vld [vmem:[%s1969_s21 + $0x10] sm:$0xff]  ;;  %s2213_s24 = smov (!%p368_p8, %s1545_s24), 1  ;;  %vm1466_vm4 = vcmask 15360  }
  0x25   : > { %1644 = vmatprep.subr.mxu0 %v387_v12  ;;  %1660 = vmatprep.subr.mxu1 %v1854_v13  ;;  %v527_v19 = vld [vmem:[%s338_s17] sm:$0xff]  ;;  %v1567_v28 = vld [vmem:[%s338_s17 + $0x8] sm:$0xff] }
  0x26   : > { %1645 = vmatpush3.msra.mxu0 %v387_v12  ;;  %1661 = vmatpush3.msra.mxu1 %v1958_v14  ;;  %v2014_v21 = vld [vmem:[%s2204_s3] ss:$0 sm:$0xff]  ;;  %v382_v54 = vld [vmem:[%s1969_s21 + $0x18] sm:$0xff]  ;;  %v384_v56 = vld [vmem:[%s1969_s21 + $0x28] sm:$0xff] }
  0x27   : > { %1646 = vmatprep.mubr.msk.f32.mxu0 %vm393_vm1, %v379_v16  ;;  %1662 = vmatprep.subr.mxu1 %v1854_v13  ;;  %v383_v55 = vld [vmem:[%s1969_s21 + $0x20] sm:$0xff]  ;;  %v385_v57 = vld [vmem:[%s1969_s21 + $0x30] sm:$0xff]  ;;  %v386_v58 = vld [vmem:[%s1969_s21 + $0x38] sm:$0xff] }
  0x28   : > { %1647 = vmatmul.mubr.msk.f32.vlgmr.msra.gmra.mxu0 %vm393_vm1, %v380_v17  ;;  %1663 = vmatpush3.msra.mxu1 %v1967_v15 }
  0x29   : > { %1664 = vmatprep.subr.mxu1 %v1854_v13  ;;  %1666 = vmatprep.mubr.msk.f32.mxu1 %vm1855_vm3, %v1854_v13 }
  0x2a   : > { %1665 = vmatpush3.msra.mxu1 %v1979_v18  ;;  %1680 = vmatprep.subr.mxu0 %v1854_v13 }
  0x2b   : > { %1667 = vmatmul.mubr.msk.f32.vlgmr.msra.gmra.mxu1 %vm530_vm2, %v527_v19  ;;  %1669 = vmatprep.subr.mxu1 %v1854_v13 }
  0x2c   : > { %1670 = vmatpush3.msra.mxu1 %v1948_v11  ;;  %1677 = vmatprep.mubr.msk.f32.mxu1 %vm1855_vm3, %v1854_v13 }
  0x2d   : > { %1671 = vmatprep.subr.mxu1 %v1854_v13  ;;  %1681 = vmatpush3.msra.mxu0 %v1948_v11 }
  0x2e   : > { %1672 = vmatpush3.msra.mxu1 %v1958_v14  ;;  %1682 = vmatprep.subr.mxu0 %v1854_v13 }
  0x2f   : > { %1673 = vmatprep.subr.mxu1 %v1854_v13  ;;  %1683 = vmatpush3.msra.mxu0 %v1958_v14 }
  0x30   : > { %1674 = vmatpush3.msra.mxu1 %v1967_v15  ;;  %1684 = vmatprep.subr.mxu0 %v1854_v13 }
  0x31   : > { %1675 = vmatprep.subr.mxu1 %v1854_v13  ;;  %1685 = vmatpush3.msra.mxu0 %v1967_v15 }
  0x32   : > { %1676 = vmatpush3.msra.mxu1 %v1979_v18  ;;  %1686 = vmatprep.subr.mxu0 %v1854_v13 }
  0x33   : > { %1687 = vmatpush3.msra.mxu0 %v1979_v18  ;;  %1691 = vmatprep.subr.mxu1 %v1854_v13 }
  0x34   : > { %1702 = vmatprep.subr.mxu0 %v1854_v13  ;;  %1649 = vmatprep.mubr.msk.f32.mxu0 %vm393_vm1, %v381_v53 }
  0x35   : > { %1650 = vmatmul.mubr.msk.f32.gmra.mxu0 %vm393_vm1, %v382_v54 }
  0x36   : > { %1652 = vmatprep.mubr.msk.f32.mxu0 %vm393_vm1, %v383_v55 }
  0x39   : > { %1653 = vmatmul.mubr.msk.f32.gmra.mxu0 %vm393_vm1, %v384_v56 }
  0x3a   : > { %1655 = vmatprep.mubr.msk.f32.mxu0 %vm393_vm1, %v385_v57 }
  0x3d   : > { %1656 = vmatmul.mubr.msk.f32.gmra.mxu0 %vm393_vm1, %v386_v58 }
  0x3e   : > { %1688 = vmatprep.mubr.msk.f32.mxu0 %vm1855_vm3, %v1854_v13 }
  0xe8   : > { %v1648_v20 = vpop.f32.mrf.mxu0 }
  0xe9   : > { %v494_v41 = vadd.f32 %v1648_v20, %v2014_v21 }
  0xea   : > { %v488_v22 = vpop.f32.mrf.mxu0 }
  0xeb   : > { %v489_v23 = vadd.f32 %v2014_v21, %v488_v22  ;;  %v600_v24 = vpop.f32.mrf.mxu1 }
  0xed   : > { %v604_v25 = vadd.f32 %v600_v24, %v489_v23  ;;  %v1668_v26 = vpop.f32.mrf.mxu1 }
  0xef   : > { %1796 = vtanh.f32 %v604_v25 }
  0xf5   : > { %v1651_v63 = vpop.f32.mrf.mxu0 }
  0xf7   : > { %v498_v0 = vpop.f32.mrf.mxu0 }
  0xf8   : > { %v499_v5 = vadd.f32 %v2014_v21, %v498_v0 }
  0xf9   : > { %v2065_v1 = vpop.f32.mrf.mxu0 }
  0xfb   : > { %v2067_v2 = vpop.f32.mrf.mxu0 }
  0xfc   : > { %v1797_v27 = vpop.eup %1796 }
  0xfd   : > { %614 = vrot.lane.b32.xlu0 %v1797_v27, %s1856_s20  ;;  %v606_v29 = vadd.f32 1.0, %v1797_v27  ;;  %v2069_v3 = vpop.f32.mrf.mxu0  ;;  %v504_v27 = vadd.f32 %v1651_v63, %v2014_v21 }
  0xff   : > { %v607_v30 = vmul.f32 0.5, %v606_v29  ;;  %v2071_v4 = vpop.f32.mrf.mxu0 }
 0x101   : > { %609 = vrot.lane.b32.xlu0 %v1567_v28, %s1857_s26 }
 0x16f   : > { %v615_v31 = vpop.permute.xlu0 %614 }
 0x170   : > { %v617_v32 = vmul.f32 %v615_v31, %v607_v30 }
 0x172   : > { %619 = vrot.lane.b32.xlu1 %v617_v32, %s1857_s26 }
 0x173   : > { %v610_v33 = vpop.permute.xlu0 %609 }
 0x174   : > { %v612_v34 = vmul.f32 %v610_v33, %v607_v30 }
 0x1e4   : > { %v620_v35 = vpop.permute.xlu1 %619 }
 0x1e5   : > { %v622_v36 = vadd.f32 %v620_v35, %v612_v34 }
 0x1e7   : > { %1798 = vtanh.f32 %v622_v36 }
 0x1f4   : > { %v1799_v37 = vpop.eup %1798 }
 0x1f5   : > { %625 = vrot.lane.b32.xlu1 %v1799_v37, %s1856_s20 }
 0x267   : > { %v626_v38 = vpop.permute.xlu1 %625 }
 0x268   : > { %v628_v39 = vmul.f32 %v626_v38, %v607_v30 }
 0x26a   : > { %630 = vrot.lane.b32.xlu0 %v628_v39, %s1857_s26 }
 0x2dc   : > { %v631_v40 = vpop.permute.xlu0 %630 }
 0x2dd   : > { %1678 = vmatmul.mubr.msk.f32.vlgmr.msra.gmra.mxu1 %vm530_vm2, %v631_v40 }
 0x2de   : > { %1692 = vmatpush3.msra.mxu1 %v1948_v11  ;;  %1699 = vmatprep.mubr.msk.f32.mxu1 %vm1855_vm3, %v1854_v13 }
 0x2df   : > { %1693 = vmatprep.subr.mxu1 %v1854_v13 }
 0x2e0   : > { %1694 = vmatpush3.msra.mxu1 %v1958_v14 }
 0x2e1   : > { %1695 = vmatprep.subr.mxu1 %v1854_v13 }
 0x2e2   : > { %1696 = vmatpush3.msra.mxu1 %v1967_v15 }
 0x2e3   : > { %1697 = vmatprep.subr.mxu1 %v1854_v13 }
 0x2e4   : > { %1698 = vmatpush3.msra.mxu1 %v1979_v18 }
 0x2e5   : > { %1713 = vmatprep.subr.mxu1 %v1854_v13 }
 0x39d   : > { %v700_v42 = vpop.f32.mrf.mxu1 }
 0x39e   : > { %v704_v43 = vadd.f32 %v700_v42, %v494_v41 }
 0x39f   : > { %v1679_v44 = vpop.f32.mrf.mxu1 }
 0x3a0   : > { %1800 = vtanh.f32 %v704_v43  ;;  %v509_v43 = vadd.f32 %v2014_v21, %v2067_v2 }
 0x3ad   : > { %v1801_v45 = vpop.eup %1800 }
 0x3ae   : > { %710 = vrot.lane.b32.xlu1 %v1801_v45, %s1856_s20  ;;  %v706_v46 = vadd.f32 1.0, %v1801_v45 }
 0x3b0   : > { %v707_v47 = vmul.f32 0.5, %v706_v46 }
 0x3b2   : > { %v708_v50 = vmul.f32 %v707_v47, %v622_v36 }
 0x420   : > { %v711_v48 = vpop.permute.xlu1 %710 }
 0x421   : > { %v713_v49 = vmul.f32 %v711_v48, %v707_v47 }
 0x423   : > { %715 = vrot.lane.b32.xlu0 %v713_v49, %s1857_s26 }
 0x495   : > { %v716_v51 = vpop.permute.xlu0 %715 }
 0x496   : > { %v718_v52 = vadd.f32 %v716_v51, %v708_v50 }
 0x498   : > { %1802 = vtanh.f32 %v718_v52 }
 0x4a5   : > { %v1803_v59 = vpop.eup %1802 }
 0x4a6   : > { %721 = vrot.lane.b32.xlu1 %v1803_v59, %s1856_s20 }
 0x518   : > { %v722_v60 = vpop.permute.xlu1 %721 }
 0x519   : > { %v724_v61 = vmul.f32 %v722_v60, %v707_v47 }
 0x51b   : > { %726 = vrot.lane.b32.xlu0 %v724_v61, %s1857_s26 }
 0x58d   : > { %v727_v62 = vpop.permute.xlu0 %726 }
 0x58e   : > { %1689 = vmatmul.mubr.msk.f32.vlgmr.msra.gmra.mxu0 %vm530_vm2, %v727_v62 }
 0x58f   : > { %1703 = vmatpush3.msra.mxu0 %v1948_v11  ;;  %1710 = vmatprep.mubr.msk.f32.mxu0 %vm1855_vm3, %v1854_v13 }
 0x590   : > { %1704 = vmatprep.subr.mxu0 %v1854_v13 }
 0x591   : > { %1705 = vmatpush3.msra.mxu0 %v1958_v14 }
 0x592   : > { %1706 = vmatprep.subr.mxu0 %v1854_v13 }
 0x593   : > { %1707 = vmatpush3.msra.mxu0 %v1967_v15 }
 0x594   : > { %1708 = vmatprep.subr.mxu0 %v1854_v13 }
 0x595   : > { %1709 = vmatpush3.msra.mxu0 %v1979_v18 }
 0x596   : > { %1724 = vmatprep.subr.mxu0 %v1854_v13 }
 0x64e   : > { %v796_v6 = vpop.f32.mrf.mxu0 }
 0x64f   : > { %v800_v7 = vadd.f32 %v796_v6, %v499_v5 }
 0x650   : > { %v1690_v8 = vpop.f32.mrf.mxu0 }
 0x651   : > { %1804 = vtanh.f32 %v800_v7 }
 0x65e   : > { %v1805_v9 = vpop.eup %1804 }
 0x65f   : > { %806 = vrot.lane.b32.xlu1 %v1805_v9, %s1856_s20  ;;  %v802_v10 = vadd.f32 1.0, %v1805_v9  ;;  %v519_v9 = vadd.f32 %v2014_v21, %v2071_v4 }
 0x661   : > { %v803_v12 = vmul.f32 0.5, %v802_v10 }
 0x663   : > { %v804_v19 = vmul.f32 %v803_v12, %v718_v52 }
 0x6d1   : > { %v807_v16 = vpop.permute.xlu1 %806 }
 0x6d2   : > { %v809_v17 = vmul.f32 %v807_v16, %v803_v12 }
 0x6d4   : > { %811 = vrot.lane.b32.xlu0 %v809_v17, %s1857_s26 }
 0x746   : > { %v812_v20 = vpop.permute.xlu0 %811 }
 0x747   : > { %v814_v22 = vadd.f32 %v812_v20, %v804_v19 }
 0x749   : > { %1806 = vtanh.f32 %v814_v22 }
 0x756   : > { %v1807_v23 = vpop.eup %1806 }
 0x757   : > { %817 = vrot.lane.b32.xlu1 %v1807_v23, %s1856_s20 }
 0x7c9   : > { %v818_v24 = vpop.permute.xlu1 %817 }
 0x7ca   : > { %v820_v25 = vmul.f32 %v818_v24, %v803_v12 }
 0x7cc   : > { %822 = vrot.lane.b32.xlu0 %v820_v25, %s1857_s26 }
 0x83e   : > { %v823_v26 = vpop.permute.xlu0 %822 }
 0x83f   : > { %1700 = vmatmul.mubr.msk.f32.vlgmr.msra.gmra.mxu1 %vm530_vm2, %v823_v26 }
 0x840   : > { %1714 = vmatpush3.msra.mxu1 %v1948_v11  ;;  %1721 = vmatprep.mubr.msk.f32.mxu1 %vm1855_vm3, %v1854_v13 }
 0x841   : > { %1715 = vmatprep.subr.mxu1 %v1854_v13 }
 0x842   : > { %1716 = vmatpush3.msra.mxu1 %v1958_v14 }
 0x843   : > { %1717 = vmatprep.subr.mxu1 %v1854_v13 }
 0x844   : > { %1718 = vmatpush3.msra.mxu1 %v1967_v15 }
 0x845   : > { %1719 = vmatprep.subr.mxu1 %v1854_v13 }
 0x846   : > { %1720 = vmatpush3.msra.mxu1 %v1979_v18 }
 0x847   : > { %1735 = vmatprep.subr.mxu1 %v1854_v13 }
 0x8ff   : > { %v892_v28 = vpop.f32.mrf.mxu1 }
 0x900   : > { %v896_v29 = vadd.f32 %v892_v28, %v504_v27 }
 0x901   : > { %v1701_v30 = vpop.f32.mrf.mxu1 }
 0x902   : > { %1808 = vtanh.f32 %v896_v29  ;;  %v524_v30 = vadd.f32 %v2069_v3, %v2014_v21  ;;  %v1303_v3 = vld [vmem:[%s2206_s5 + $0x10] sm:$0xff] }
 0x90f   : > { %v1809_v31 = vpop.eup %1808 }
 0x910   : > { %902 = vrot.lane.b32.xlu1 %v1809_v31, %s1856_s20  ;;  %v898_v32 = vadd.f32 1.0, %v1809_v31 }
 0x912   : > { %v899_v33 = vmul.f32 0.5, %v898_v32 }
 0x914   : > { %v900_v36 = vmul.f32 %v899_v33, %v814_v22 }
 0x982   : > { %v903_v34 = vpop.permute.xlu1 %902 }
 0x983   : > { %v905_v35 = vmul.f32 %v903_v34, %v899_v33 }
 0x985   : > { %907 = vrot.lane.b32.xlu0 %v905_v35, %s1857_s26 }
 0x9f7   : > { %v908_v37 = vpop.permute.xlu0 %907 }
 0x9f8   : > { %v910_v38 = vadd.f32 %v908_v37, %v900_v36 }
 0x9fa   : > { %1810 = vtanh.f32 %v910_v38 }
 0xa07   : > { %v1811_v39 = vpop.eup %1810 }
 0xa08   : > { %913 = vrot.lane.b32.xlu1 %v1811_v39, %s1856_s20 }
 0xa7a   : > { %v914_v40 = vpop.permute.xlu1 %913 }
 0xa7b   : > { %v916_v41 = vmul.f32 %v914_v40, %v899_v33 }
 0xa7d   : > { %918 = vrot.lane.b32.xlu0 %v916_v41, %s1857_s26 }
 0xaef   : > { %v919_v42 = vpop.permute.xlu0 %918 }
 0xaf0   : > { %1711 = vmatmul.mubr.msk.f32.vlgmr.msra.gmra.mxu0 %vm530_vm2, %v919_v42  ;;  %v1302_v42 = vld [vmem:[%s2206_s5 + $0x8] sm:$0xff] }
 0xaf1   : > { %1725 = vmatpush3.msra.mxu0 %v1948_v11  ;;  %1732 = vmatprep.mubr.msk.f32.mxu0 %vm1855_vm3, %v1854_v13 }
 0xaf2   : > { %1726 = vmatprep.subr.mxu0 %v1854_v13 }
 0xaf3   : > { %1727 = vmatpush3.msra.mxu0 %v1958_v14 }
 0xaf4   : > { %1728 = vmatprep.subr.mxu0 %v1854_v13 }
 0xaf5   : > { %1729 = vmatpush3.msra.mxu0 %v1967_v15 }
 0xaf6   : > { %1730 = vmatprep.subr.mxu0 %v1854_v13 }
 0xaf7   : > { %1731 = vmatpush3.msra.mxu0 %v1979_v18 }
 0xaf8   : > { %1746 = vmatprep.subr.mxu0 %v1854_v13 }
 0xbb0   : > { %v988_v44 = vpop.f32.mrf.mxu0 }
 0xbb1   : > { %v992_v45 = vadd.f32 %v988_v44, %v509_v43  ;;  %v1301_v43 = vld [vmem:[%s2206_s5] sm:$0xff] }
 0xbb2   : > { %v1712_v46 = vpop.f32.mrf.mxu0 }
 0xbb3   : > { %1812 = vtanh.f32 %v992_v45 }
 0xbc0   : > { %v1813_v47 = vpop.eup %1812 }
 0xbc1   : > { %998 = vrot.lane.b32.xlu1 %v1813_v47, %s1856_s20  ;;  %v994_v48 = vadd.f32 1.0, %v1813_v47 }
 0xbc3   : > { %v995_v49 = vmul.f32 0.5, %v994_v48  ;;  %v1308_v48 = vld [vmem:[%s2206_s5 + $0x38] sm:$0xff] }
 0xbc5   : > { %v996_v52 = vmul.f32 %v995_v49, %v910_v38 }
 0xc33   : > { %v999_v50 = vpop.permute.xlu1 %998 }
 0xc34   : > { %v1001_v51 = vmul.f32 %v999_v50, %v995_v49  ;;  %v1306_v50 = vld [vmem:[%s2206_s5 + $0x28] sm:$0xff] }
 0xc36   : > { %1003 = vrot.lane.b32.xlu0 %v1001_v51, %s1857_s26  ;;  %v1305_v51 = vld [vmem:[%s2206_s5 + $0x20] sm:$0xff] }
 0xca8   : > { %v1004_v53 = vpop.permute.xlu0 %1003 }
 0xca9   : > { %v1006_v54 = vadd.f32 %v1004_v53, %v996_v52  ;;  %v1576_v52 = vld [vmem:[%s2204_s3 + $0x1] ss:$0 sm:$0xff] }
 0xcab   : > { %1814 = vtanh.f32 %v1006_v54 }
 0xcb8   : > { %v1815_v55 = vpop.eup %1814 }
 0xcb9   : > { %1009 = vrot.lane.b32.xlu1 %v1815_v55, %s1856_s20 }
 0xd2b   : > { %v1010_v56 = vpop.permute.xlu1 %1009 }
 0xd2c   : > { %v1012_v57 = vmul.f32 %v1010_v56, %v995_v49  ;;  %v1307_v49 = vld [vmem:[%s2206_s5 + $0x30] sm:$0xff] }
 0xd2e   : > { %1014 = vrot.lane.b32.xlu0 %v1012_v57, %s1857_s26 }
 0xda0   : > { %v1015_v58 = vpop.permute.xlu0 %1014 }
 0xda1   : > { %1722 = vmatmul.mubr.msk.f32.vlgmr.msra.gmra.mxu1 %vm530_vm2, %v1015_v58 }
 0xda2   : > { %1736 = vmatpush3.msra.mxu1 %v1948_v11  ;;  %1743 = vmatprep.mubr.msk.f32.mxu1 %vm1855_vm3, %v1854_v13  ;;  %v514_v11 = vadd.f32 %v2065_v1, %v2014_v21  ;;  %v1304_v21 = vld [vmem:[%s2206_s5 + $0x18] sm:$0xff] }
 0xda3   : > { %1737 = vmatprep.subr.mxu1 %v1854_v13 }
 0xda4   : > { %1738 = vmatpush3.msra.mxu1 %v1958_v14 }
 0xda5   : > { %1739 = vmatprep.subr.mxu1 %v1854_v13 }
 0xda6   : > { %1740 = vmatpush3.msra.mxu1 %v1967_v15 }
 0xda7   : > { %1741 = vmatprep.subr.mxu1 %v1854_v13 }
 0xda8   : > { %1742 = vmatpush3.msra.mxu1 %v1979_v18 }
 0xda9   : > { %1757 = vmatprep.subr.mxu1 %v1854_v13 }
 0xe61   : > { %v1084_v59 = vpop.f32.mrf.mxu1 }
 0xe62   : > { %v1088_v60 = vadd.f32 %v1084_v59, %v514_v11 }
 0xe63   : > { %v1723_v61 = vpop.f32.mrf.mxu1 }
 0xe64   : > { %1816 = vtanh.f32 %v1088_v60 }
 0xe71   : > { %v1817_v62 = vpop.eup %1816 }
 0xe72   : > { %1094 = vrot.lane.b32.xlu1 %v1817_v62, %s1856_s20  ;;  %v1090_v14 = vadd.f32 1.0, %v1817_v62 }
 0xe74   : > { %v1091_v63 = vmul.f32 0.5, %v1090_v14 }
 0xe76   : > { %v1092_v2 = vmul.f32 %v1091_v63, %v1006_v54 }
 0xee4   : > { %v1095_v0 = vpop.permute.xlu1 %1094 }
 0xee5   : > { %v1097_v15 = vmul.f32 %v1095_v0, %v1091_v63 }
 0xee7   : > { %1099 = vrot.lane.b32.xlu0 %v1097_v15, %s1857_s26 }
 0xf59   : > { %v1100_v18 = vpop.permute.xlu0 %1099 }
 0xf5a   : > { %v1102_v5 = vadd.f32 %v1100_v18, %v1092_v2 }
 0xf5c   : > { %1818 = vtanh.f32 %v1102_v5 }
 0xf69   : > { %v1819_v6 = vpop.eup %1818 }
 0xf6a   : > { %1105 = vrot.lane.b32.xlu1 %v1819_v6, %s1856_s20 }
 0xfdc   : > { %v1106_v1 = vpop.permute.xlu1 %1105 }
 0xfdd   : > { %v1108_v7 = vmul.f32 %v1106_v1, %v1091_v63 }
 0xfdf   : > { %1110 = vrot.lane.b32.xlu0 %v1108_v7, %s1857_s26 }
0x1051   : > { %v1111_v8 = vpop.permute.xlu0 %1110 }
0x1052   : > { %1733 = vmatmul.mubr.msk.f32.vlgmr.msra.gmra.mxu0 %vm530_vm2, %v1111_v8 }
0x1053   : > { %1754 = vmatprep.mubr.msk.f32.mxu0 %vm1855_vm3, %v1854_v13  ;;  %1747 = vmatpush3.msra.mxu0 %v1304_v21 }
0x1054   : > { %1748 = vmatprep.subr.mxu0 %v1854_v13 }
0x1055   : > { %1749 = vmatpush3.msra.mxu0 %v1303_v3 }
0x1056   : > { %1750 = vmatprep.subr.mxu0 %v1854_v13 }
0x1057   : > { %1751 = vmatpush3.msra.mxu0 %v1302_v42 }
0x1058   : > { %1752 = vmatprep.subr.mxu0 %v1854_v13 }
0x1059   : > { %1753 = vmatpush3.msra.mxu0 %v1301_v43 }
0x1112   : > { %v1180_v10 = vpop.f32.mrf.mxu0 }
0x1113   : > { %v1184_v12 = vadd.f32 %v1180_v10, %v519_v9 }
0x1114   : > { %v1734_v16 = vpop.f32.mrf.mxu0 }
0x1115   : > { %1820 = vtanh.f32 %v1184_v12 }
0x1122   : > { %v1821_v17 = vpop.eup %1820 }
0x1123   : > { %1190 = vrot.lane.b32.xlu1 %v1821_v17, %s1856_s20  ;;  %v1186_v19 = vadd.f32 1.0, %v1821_v17 }
0x1125   : > { %v1187_v20 = vmul.f32 0.5, %v1186_v19 }
0x1127   : > { %v1188_v24 = vmul.f32 %v1187_v20, %v1102_v5 }
0x1195   : > { %v1191_v22 = vpop.permute.xlu1 %1190 }
0x1196   : > { %v1193_v23 = vmul.f32 %v1191_v22, %v1187_v20 }
0x1198   : > { %1195 = vrot.lane.b32.xlu0 %v1193_v23, %s1857_s26 }
0x120a   : > { %v1196_v25 = vpop.permute.xlu0 %1195 }
0x120b   : > { %v1198_v26 = vadd.f32 %v1196_v25, %v1188_v24 }
0x120d   : > { %1822 = vtanh.f32 %v1198_v26 }
0x121a   : > { %v1823_v27 = vpop.eup %1822 }
0x121b   : > { %1201 = vrot.lane.b32.xlu1 %v1823_v27, %s1856_s20 }
0x128d   : > { %v1202_v4 = vpop.permute.xlu1 %1201 }
0x128e   : > { %v1204_v28 = vmul.f32 %v1202_v4, %v1187_v20 }
0x1290   : > { %1206 = vrot.lane.b32.xlu0 %v1204_v28, %s1857_s26 }
0x1302   : > { %v1207_v29 = vpop.permute.xlu0 %1206 }
0x1303   : > { %1744 = vmatmul.mubr.msk.f32.vlgmr.msra.gmra.mxu1 %vm530_vm2, %v1207_v29 }
0x1304   : > { %1765 = vmatprep.mubr.msk.f32.mxu1 %vm1855_vm3, %v1854_v13  ;;  %1758 = vmatpush3.msra.mxu1 %v1308_v48 }
0x1305   : > { %1759 = vmatprep.subr.mxu1 %v1854_v13 }
0x1306   : > { %1760 = vmatpush3.msra.mxu1 %v1307_v49 }
0x1307   : > { %1761 = vmatprep.subr.mxu1 %v1854_v13 }
0x1308   : > { %1762 = vmatpush3.msra.mxu1 %v1306_v50 }
0x1309   : > { %1763 = vmatprep.subr.mxu1 %v1854_v13  ;;  %v1578_v13 = vld [vmem:[%s2204_s3 + $0x2] ss:$0 sm:$0xff] }
0x130a   : > { %1764 = vmatpush3.msra.mxu1 %v1305_v51 }
0x13c3   : > { %v1276_v31 = vpop.f32.mrf.mxu1 }
0x13c4   : > { %v1280_v32 = vadd.f32 %v1276_v31, %v524_v30 }
0x13c5   : > { %v1745_v33 = vpop.f32.mrf.mxu1 }
0x13c6   : > { %1824 = vtanh.f32 %v1280_v32 }
0x13d3   : > { %v1825_v34 = vpop.eup %1824 }
0x13d4   : > { %1286 = vrot.lane.b32.xlu1 %v1825_v34, %s1856_s20  ;;  %v1282_v35 = vadd.f32 1.0, %v1825_v34 }
0x13d6   : > { %v1283_v36 = vmul.f32 0.5, %v1282_v35 }
0x13d8   : > { %v1284_v39 = vmul.f32 %v1283_v36, %v1198_v26 }
0x1446   : > { %v1287_v37 = vpop.permute.xlu1 %1286 }
0x1447   : > { %v1289_v38 = vmul.f32 %v1287_v37, %v1283_v36 }
0x1449   : > { %1291 = vrot.lane.b32.xlu0 %v1289_v38, %s1857_s26 }
0x14bb   : > { %v1292_v40 = vpop.permute.xlu0 %1291 }
0x14bc   : > { %v1294_v41 = vadd.f32 %v1292_v40, %v1284_v39 }
0x14be   : > { %1826 = vtanh.f32 %v1294_v41 }
0x14cb   : > { %v1827_v44 = vpop.eup %1826 }
0x14cc   : > { %1297 = vrot.lane.b32.xlu1 %v1827_v44, %s1856_s20 }
0x153e   : > { %v1298_v45 = vpop.permute.xlu1 %1297 }
0x153f   : > { %v1300_v46 = vmul.f32 %v1298_v45, %v1283_v36 }
0x1541   : > { %1314 = vrot.lane.b32.xlu0 %v1300_v46, %s1857_s26  ;;  %s1556_s26 = sshll.u32 %s2213_s24, 3 }
0x1542   : > { %s371_s8 = scalar_lea.vmem %s2207_s6, %s1556_s26 }
0x15b3   : > { %v1315_v47 = vpop.permute.xlu0 %1314 }
0x15b4   : > { %1755 = vmatmul.mubr.msk.f32.vlgmr.msra.gmra.mxu0 %vm530_vm2, %v1315_v47 }
0x1674   : > { %v1384_v53 = vpop.f32.mrf.mxu0 }
0x1675   : > { %v1385_v54 = vadd.f32 %v1576_v52, %v1384_v53 }
0x1676   : > { %v1756_v55 = vpop.f32.mrf.mxu0 }
0x1677   : > { %1828 = vtanh.f32 %v1385_v54 }
0x1684   : > { %v1829_v56 = vpop.eup %1828 }
0x1685   : > { %1766 = vmatmul.mubr.msk.f32.vlgmr.msra.gmra.mxu1 %vm530_vm2, %v1829_v56 }
0x1745   : > { %v1462_v57 = vpop.f32.mrf.mxu1 }
0x1746   : > { %v1463_v58 = vadd.f32 %v1578_v13, %v1462_v57 }
0x1747   : > { %v1767_v11 = vpop.f32.mrf.mxu1 }
0x1748   : > { %1467 = vst.msk [vmem:[%s371_s8] sm:$0xff] %vm1466_vm4, %v1463_v58 }
0x1749 PF: > { %p13_p9 = scmp.ge.s32.totalorder %s1910_s25, 4   ;;  %s2209_s21 = smov %s1848_s22 }
0x174a   : > { %s2210_s22 = smov %s1919_s28  ;;  %s2211_s23 = smov %s1910_s25 }
0x174b   :  { %15 = sbr.rel (!%p13_p9) target bundleno = 2 (0x2), region = 164 }

</bundles_post_ra>
